<compile_context>
chip_gen: v5e
topology: v5e:2x2
jax: 0.10.0
libtpu: 0.0.40
codegen_flags: <defaults>
</compile_context>

<pallas_src>
import jax
import jax.numpy as jnp
from jax.experimental import pallas as pl
from jax.experimental.pallas import tpu as pltpu


_NEG_LARGE = -1e30            # finite "minus infinity" for masking
_MIB = 1024 * 1024


def _round_up(x, m):
    return ((x + m - 1) // m) * m


def _pad_to(x, target_shape):
    pads = tuple((0, t - s) for s, t in zip(x.shape, target_shape))
    if all(p == (0, 0) for p in pads):
        return x
    return jnp.pad(x, pads)


def _vmem_budget_bytes():
    """Generation-aware scoped-VMEM budget."""
    try:
        cap = pltpu.get_tpu_info().vmem_capacity_bytes
    except Exception:          # no TPU info available -> assume smallest (v7x)
        cap = 64 * _MIB
    if cap >= 100 * _MIB:      # v5e / v6e: 128 MiB physical VMEM
        return 96 * _MIB
    return 48 * _MIB           # v7x: 64 MiB physical -> leave Mosaic headroom


def _attn_vmem_bytes(block_lc, lq_pad, h_pad, in_bytes, out_bytes):
    """Conservative per-step working-set estimate for the attention kernel."""
    bf16, f32 = 2, 4
    c_blk = 2 * block_lc * h_pad * in_bytes          # C tile (double-buffered)
    o_blk = 2 * block_lc * h_pad * out_bytes         # out tile (double-buffered)
    qp_blk = 2 * lq_pad * h_pad * bf16               # qp slab (2x for safety)
    w_blk = 2 * h_pad * h_pad * bf16                 # weight
    small = 2 * (lq_pad + h_pad) * f32               # mask + bias
    temps = (block_lc * lq_pad * (f32 + bf16)        # scores + p (bf16 copy)
             + block_lc * h_pad * (2 * f32 + bf16))  # cp, out_unnorm, cp(bf16)
    return c_blk + o_blk + qp_blk + w_blk + small + temps


def _proj_vmem_bytes(block_lq, h_pad, in_bytes):
    bf16, f32 = 2, 4
    return (2 * block_lq * h_pad * (in_bytes + bf16)   # Q in + qp out blocks
            + 2 * h_pad * h_pad * bf16                 # weight
            + 2 * h_pad * f32                          # bias
            + block_lq * h_pad * (f32 + bf16))         # temps


def _q_project_kernel(q_ref, w_ref, b_ref, qp_ref):
    # q_ref : (1, TLq, Hp) caller dtype     w_ref : (Hp, Hp) bf16 (in, out)
    # b_ref : (1, Hp) f32                   qp_ref: (1, TLq, Hp) bf16
    proj = jnp.dot(q_ref[0].astype(jnp.bfloat16), w_ref[...],
                   preferred_element_type=jnp.float32) + b_ref[...]
    qp_ref[0] = jnp.maximum(proj, 0.0).astype(jnp.bfloat16)


def _attn_unit_kernel(c_ref, qp_ref, mask_ref, w_ref, b_ref, o_ref):
    # c_ref   : (1, TLc, Hp)  context tile (caller dtype)
    # qp_ref  : (1, Lqp, Hp)  precomputed relu(Q @ W + b), bf16
    # mask_ref: (1, 1, Lqp)   additive mask: 0.0 valid, -1e30 masked/pad (f32)
    # w_ref   : (Hp, Hp)      linear weight transposed to (in, out), bf16
    # b_ref   : (1, Hp)       linear bias, f32
    # o_ref   : (1, TLc, Hp)  output tile (caller dtype)
    qp = qp_ref[0]

    # Context projection: bf16 MXU operands, f32 accumulation.
    cp = jnp.maximum(
        jnp.dot(c_ref[0].astype(jnp.bfloat16), w_ref[...],
                preferred_element_type=jnp.float32) + b_ref[...], 0.0)

    # Attention scores: NT contraction on the last axes (no XLU transpose).
    scores = jax.lax.dot_general(
        cp.astype(jnp.bfloat16), qp,
        dimension_numbers=(((1,), (1,)), ((), ())),
        preferred_element_type=jnp.float32)               # (TLc, Lqp)
    scores = scores + mask_ref[0]                         # additive mask

    # Softmax over the question axis with deferred (exact) normalization.
    m = jnp.max(scores, axis=-1, keepdims=True)
    p = jnp.exp(scores - m)
    denom = jnp.sum(p, axis=-1, keepdims=True)            # (TLc, 1)

    out_unnorm = jnp.dot(p.astype(jnp.bfloat16), qp,
                         preferred_element_type=jnp.float32)  # (TLc, Hp)
    o_ref[0] = (out_unnorm / denom).astype(o_ref.dtype)


def attention_unit(C, Q, Q_mask, W, b, *, max_block_lc=512):
    """C: (B, Lc, H), Q: (B, Lq, H), Q_mask: (B, Lq) bool (True = masked).
    W: (H, H) nn.Linear weight (out, in).  b: (H,) bias."""
    B, Lc, H = C.shape
    _, Lq, _ = Q.shape

    # Lane-dense padding of the hidden and question axes (128-multiples).
    H_pad = _round_up(max(H, 128), 128)
    Lq_pad = _round_up(max(Lq, 128), 128)

    budget = _vmem_budget_bytes()
    in_bytes = jnp.dtype(C.dtype).itemsize
    out_bytes = in_bytes

    # Context-tile chooser: biggest multiple of 8 (<= max_block_lc) in budget.
    block_lc = min(max_block_lc, _round_up(Lc, 8))
    while block_lc > 8 and _attn_vmem_bytes(block_lc, Lq_pad, H_pad,
                                            in_bytes, out_bytes) > budget:
        block_lc = max(8, _round_up(block_lc // 2, 8))
    Lc_pad = _round_up(Lc, block_lc)
    num_lc_tiles = Lc_pad // block_lc

    # Question-tile chooser for the projection kernel (halving keeps it a
    # divisor of Lq_pad and a multiple of 8).
    block_lq = Lq_pad
    while block_lq > 8 and _proj_vmem_bytes(block_lq, H_pad, in_bytes) > budget:
        block_lq //= 2
    num_lq_tiles = Lq_pad // block_lq

    # Inputs stay in the caller's dtype (no f32 up-cast pre-pass); the weight
    # goes to bf16 once in HBM so every tile DMA is half-width.
    C_p = _pad_to(C, (B, Lc_pad, H_pad))
    Q_p = _pad_to(Q, (B, Lq_pad, H_pad))
    W_p = _pad_to(W.T, (H_pad, H_pad)).astype(jnp.bfloat16)   # (in, out)
    b_p = _pad_to(b, (H_pad,)).astype(jnp.float32).reshape(1, H_pad)

    # Additive mask: 0.0 for valid positions, -1e30 for masked + Lq padding.
    valid = _pad_to(jnp.logical_not(Q_mask), (B, Lq_pad))
    mask_add = jnp.where(valid, 0.0, _NEG_LARGE).astype(jnp.float32)
    mask_add = mask_add.reshape(B, 1, Lq_pad)

    vmem_limit = int(budget)

    # --- Stage 1: project Q once per batch element (bf16 output). -----------
    qp = pl.pallas_call(
        _q_project_kernel,
        out_shape=jax.ShapeDtypeStruct((B, Lq_pad, H_pad), jnp.bfloat16),
        grid_spec=pltpu.PrefetchScalarGridSpec(
            num_scalar_prefetch=0,
            grid=(B, num_lq_tiles),
            in_specs=[
                pl.BlockSpec((1, block_lq, H_pad), lambda bi, li: (bi, li, 0)),
                pl.BlockSpec((H_pad, H_pad), lambda bi, li: (0, 0)),
                pl.BlockSpec((1, H_pad), lambda bi, li: (0, 0)),
            ],
            out_specs=pl.BlockSpec((1, block_lq, H_pad),
                                   lambda bi, li: (bi, li, 0)),
        ),
        compiler_params=pltpu.CompilerParams(
            dimension_semantics=("parallel", "parallel"),
            vmem_limit_bytes=vmem_limit,
        ),
    )(Q_p, W_p, b_p)

    # --- Stage 2: fused C projection + masked softmax attention. ------------
    def _run(single_buffer_invariants):
        def inv_spec(shape, index_map):
            # Grid-invariant inputs: a single VMEM buffer is enough (Pallas
            # never re-fetches a repeated block index), freeing VMEM for
            # bigger context tiles.
            if single_buffer_invariants:
                return pl.BlockSpec(shape, index_map,
                                    pipeline_mode=pl.Buffered(1))
            return pl.BlockSpec(shape, index_map)

        return pl.pallas_call(
            _attn_unit_kernel,
            out_shape=jax.ShapeDtypeStruct((B, Lc_pad, H_pad), C.dtype),
            grid_spec=pltpu.PrefetchScalarGridSpec(
                num_scalar_prefetch=0,
                grid=(B, num_lc_tiles),
                in_specs=[
                    pl.BlockSpec((1, block_lc, H_pad),
                                 lambda bi, li: (bi, li, 0)),
                    inv_spec((1, Lq_pad, H_pad), lambda bi, li: (bi, 0, 0)),
                    inv_spec((1, 1, Lq_pad), lambda bi, li: (bi, 0, 0)),
                    inv_spec((H_pad, H_pad), lambda bi, li: (0, 0)),
                    inv_spec((1, H_pad), lambda bi, li: (0, 0)),
                ],
                out_specs=pl.BlockSpec((1, block_lc, H_pad),
                                       lambda bi, li: (bi, li, 0)),
            ),
            compiler_params=pltpu.CompilerParams(
                # No cross-tile scratch carry anymore -> both axes parallel
                # (lets both v7x TensorCores shard Lc even at batch size 1).
                dimension_semantics=("parallel", "parallel"),
                vmem_limit_bytes=vmem_limit,
            ),
        )(C_p, qp, mask_add, W_p, b_p)

    try:
        out = jax.block_until_ready(_run(True))
    except Exception:
        # Graceful degradation for JAX versions where single-buffering via
        # pipeline_mode=pl.Buffered(1) is not supported.
        out = jax.block_until_ready(_run(False))

    if Lc_pad == Lc and H_pad == H:
        return out
    return out[:, :Lc, :H]


def _reference(C, Q, Q_mask, W, b):
    cp = jax.nn.relu(jnp.einsum("blh,oh->blo", C, W) + b)
    qp = jax.nn.relu(jnp.einsum("blh,oh->blo", Q, W) + b)
    scores = jnp.einsum("bch,bqh->bcq", cp, qp)
    scores = jnp.where(Q_mask[:, None, :], -jnp.inf, scores)
    a = jax.nn.softmax(scores, axis=-1)
    return jnp.einsum("bcq,bqh->bch", a, qp)


if __name__ == "__main__":
    key = jax.random.PRNGKey(0)
    B, Lc, Lq, H = 2, 8, 8, 32

    k1, k2, k3, k4 = jax.random.split(key, 4)
    C = jax.random.normal(k1, (B, Lc, H), dtype=jnp.float32)
    Q = jax.random.normal(k2, (B, Lq, H), dtype=jnp.float32)
    # Mask out the last 3 question positions in every batch element.
    Q_mask = jnp.arange(Lq)[None, :] >= (Lq - 3)
    Q_mask = jnp.broadcast_to(Q_mask, (B, Lq))

    # Deterministic nn.Linear(in_size, in_size)-shaped parameters.
    bound = 1.0 / jnp.sqrt(jnp.float32(H))
    W = jax.random.uniform(k3, (H, H), minval=-bound, maxval=bound,
                           dtype=jnp.float32)
    b = jax.random.uniform(k4, (H,), minval=-bound, maxval=bound,
                           dtype=jnp.float32)

    out = attention_unit(C, Q, Q_mask, W, b)
    out = jax.block_until_ready(out)

    ref = _reference(C, Q, Q_mask, W, b)
    assert out.shape == (B, Lc, H)
    # Tolerance accounts for bf16 MXU operands (with f32 accumulation) vs the
    # all-f32 reference.
    assert jnp.allclose(out, ref, atol=5e-2, rtol=5e-2), "mismatch vs reference"

    print("KERNEL_OK")
</pallas_src>

<mosaic_0001>
module attributes {stable_mosaic.version = 11 : i64} {
  func.func @_q_project_kernel(%arg0: i32, %arg1: i32, %arg2: memref<1x128x128xf32, #tpu.memory_space<vmem>>, %arg3: memref<128x128xbf16, #tpu.memory_space<vmem>>, %arg4: memref<1x128xf32, #tpu.memory_space<vmem>>, %arg5: memref<1x128x128xbf16, #tpu.memory_space<vmem>>) attributes {dimension_semantics = [#tpu.dimension_semantics<parallel>, #tpu.dimension_semantics<parallel>], iteration_bounds = array<i64: 2, 1>, scalar_prefetch = 0 : i64, scratch_operands = 0 : i64, tpu.core_type = #tpu.core_type<tc>, window_params = [{transform_indices = @transform_0, window_bounds = array<i64: 1, 128, 128>}, {pipeline_mode = #tpu.pipeline_mode<synchronous>, transform_indices = @transform_1, window_bounds = array<i64: 128, 128>}, {pipeline_mode = #tpu.pipeline_mode<synchronous>, transform_indices = @transform_2, window_bounds = array<i64: 1, 128>}, {transform_indices = @transform_3, window_bounds = array<i64: 1, 128, 128>}]} {
    %c0 = arith.constant 0 : index
    %c0_0 = arith.constant 0 : index
    %c0_1 = arith.constant 0 : index
    %0 = vector.load %arg2[%c0, %c0_0, %c0_1] : memref<1x128x128xf32, #tpu.memory_space<vmem>>, vector<1x128x128xf32>
    %1 = vector.shape_cast %0 : vector<1x128x128xf32> to vector<128x128xf32>
    %2 = arith.truncf %1 : vector<128x128xf32> to vector<128x128xbf16>
    %c0_2 = arith.constant 0 : index
    %c0_3 = arith.constant 0 : index
    %3 = vector.load %arg3[%c0_2, %c0_3] : memref<128x128xbf16, #tpu.memory_space<vmem>>, vector<128x128xbf16>
    %cst = arith.constant dense<0.000000e+00> : vector<128x128xf32>
    %4 = tpu.matmul %2, %3, %cst {dimension_numbers = #tpu.dot_dimension_numbers<[1], [0], [0], [1], [0, 0, 1, 1], [], []>} : vector<128x128xbf16>, vector<128x128xbf16>, vector<128x128xf32> -> vector<128x128xf32>
    %c0_4 = arith.constant 0 : index
    %c0_5 = arith.constant 0 : index
    %5 = vector.load %arg4[%c0_4, %c0_5] : memref<1x128xf32, #tpu.memory_space<vmem>>, vector<1x128xf32>
    %6 = vector.broadcast %5 : vector<1x128xf32> to vector<128x128xf32>
    %7 = arith.addf %4, %6 : vector<128x128xf32>
    %cst_6 = arith.constant 0.000000e+00 : f32
    %8 = vector.broadcast %cst_6 : f32 to vector<128x128xf32>
    %9 = arith.maximumf %7, %8 : vector<128x128xf32>
    %10 = arith.truncf %9 : vector<128x128xf32> to vector<128x128xbf16>
    %c0_7 = arith.constant 0 : index
    %c0_8 = arith.constant 0 : index
    %c0_9 = arith.constant 0 : index
    %11 = vector.load %arg5[%c0_7, %c0_8, %c0_9] : memref<1x128x128xbf16, #tpu.memory_space<vmem>>, vector<1x128x128xbf16>
    %12 = vector.shape_cast %11 : vector<1x128x128xbf16> to vector<128x128xbf16>
    %13 = vector.shape_cast %10 : vector<128x128xbf16> to vector<1x128x128xbf16>
    tpu.vector_store %arg5[%c0_7, %c0_8, %c0_9], %13 {strides = array<i32>} : memref<1x128x128xbf16, #tpu.memory_space<vmem>>, vector<1x128x128xbf16>,
    return
  }
  func.func @transform_0(%arg0: i32, %arg1: i32) -> (i32, i32, i32) {
    %c0_i32 = arith.constant 0 : i32
    %c0_i32_0 = arith.constant 0 : i32
    return %arg0, %arg1, %c0_i32 : i32, i32, i32
  }
  func.func @transform_1(%arg0: i32, %arg1: i32) -> (i32, i32) {
    %c0_i32 = arith.constant 0 : i32
    %c0_i32_0 = arith.constant 0 : i32
    %c0_i32_1 = arith.constant 0 : i32
    return %c0_i32, %c0_i32_0 : i32, i32
  }
  func.func @transform_2(%arg0: i32, %arg1: i32) -> (i32, i32) {
    %c0_i32 = arith.constant 0 : i32
    %c0_i32_0 = arith.constant 0 : i32
    %c0_i32_1 = arith.constant 0 : i32
    return %c0_i32, %c0_i32_0 : i32, i32
  }
  func.func @transform_3(%arg0: i32, %arg1: i32) -> (i32, i32, i32) {
    %c0_i32 = arith.constant 0 : i32
    %c0_i32_0 = arith.constant 0 : i32
    return %arg0, %arg1, %c0_i32 : i32, i32, i32
  }
}

</mosaic_0001>

<bundles_post_ra>
// kernel: tpu_custom_call.1
= control target key start
LH: loop header
LB: loop body
LE: loop exit
PB: predicated region body
PF: predicated region fallthrough
CT: control target
= control target key end

     0   :  { %s1099_s0 = inlined_call_operand.hbm [shape: f32[2,128,128], index: 0, kind: input, shape index: {}]   ;;  %s1100_s1 = inlined_call_operand.hbm [shape: bf16[128,128], index: 1, kind: input, shape index: {}]   ;;  %s1101_s2 = inlined_call_operand.vmem [shape: f32[1,128], index: 2, kind: input, shape index: {}]   ;;  %s1102_s3 = inlined_call_operand.hbm [shape: bf16[2,128,128], index: 3, kind: output, shape index: {}]  }
   0x1   :  { %1103 = sst [smem:[#allocation11_spill]] %s1100_s1 }
   0x2   :  { %8 = vsyncpa [#allocation3], 0 }
   0x3   :  { %10 = vsyncpa [#allocation3 + $0x1], 0 }
   0x4   :  { %11 = vsyncpa [#allocation6], 0 }
   0x5   :  { %12 = vsyncpa [#allocation4], 0 }
   0x6   :  { %14 = vsyncpa [#allocation4 + $0x1], 0  ;;  %s917_s12 = smov 0   ;;  %s919_s13 = smov 0  }
   0x7   :  { %s921_s14 = smov 0   ;;  %s923_s15 = smov 0  }
   0x8   :  { %s925_s16 = smov 0   ;;  %s927_s17 = smov 0  }
   0x9 LB: > { %s532_s18 = sadd.s32 4294967295, %s888_s17   ;;  %s533_s19 = sadd.s32 4294967294, %s888_s17   ;;  %s888_s17 = sphi %s927_s17, %s20_s17   ;;  %s884_s16 = sphi %s925_s16, %s1116_s16   ;;  %s880_s15 = sphi %s923_s15, %s1115_s15   ;;  %s876_s14 = sphi %s921_s14, %s1114_s14   ;;  %s872_s13 = sphi %s919_s13, %s1113_s13   ;;  %s868_s12 = sphi %s917_s12, %s1112_s12  }
   0xa   : > { %p54_p0 = scmp.ne.s32.totalorder %s872_s13, %s868_s12  ;;  %p951_p1 = scmp.eq.s32.totalorder %s532_s18, 0 }
   0xb   : > { %p955_p2 = scmp.eq.s32.totalorder %s532_s18, 1  ;;  %p128_p3 = scmp.eq.s32.totalorder %s533_s19, 1 }
   0xc   : > { %p961_p4 = por %p951_p1, %p54_p0  ;;  %p534_p5 = scmp.ge.s32.totalorder %s888_s17, 1 }
   0xd   : > { %p966_p6 = por %p128_p3, %p54_p0  ;;  %p135_p7 = scmp.lt.s32.totalorder %s888_s17, 3 }
   0xe   : > { %s1108_s1 = sld [smem:[#allocation11_spill]]  ;;  %s890_s28 = smov [#allocation5]  }
   0xf   : > { %p974_p8 = pnand %p534_p5, %p135_p7  ;;  %s148_s29 = sshll.u32 %s890_s28, 4  ;;  %s149_s29 = int_to_ptr.vmem [resolvable:$true] %s148_s29 }
  0x10   : > { %p536_p11 = scmp.ge.s32.totalorder %s888_s17, 2  ;;  %s891_s30 = smov 64  }
  0x11   : > { %p670_p9 = pneg %p974_p8  ;;  %s892_s4 = smov 4  }
  0x12   : > { %s32_s5 = sadd.s32 1, %s884_s16  ;;  %s41_s6 = sadd.s32 1, %s876_s14 }
  0x13   : > { %p671_p10 = pnand %p670_p9, %p951_p1  ;;  %p34_p12 = scmp.ge.s32.totalorder %s32_s5, 2 }
  0x14   : > { %s146_s26 = sshll.u32 %s1108_s1, 4  ;;  %p48_p13 = scmp.ne.s32.totalorder %s876_s14, %s872_s13  ;;  %s147_s26 = int_to_ptr.hbm [resolvable:$true] %s146_s26 }
  0x15   : > { %673 = dma.hbm_to_vmem [thread:$0]  (!%p671_p10), %s147_s26, 1024, %s149_s29, [#allocation6], %s891_s30, %s891_s30, %s892_s4  }
  0x16   : > { %p49_p0 = scmp.eq.s32.totalorder %s888_s17, 0  ;;  %s1118_s5 = smov (%p34_p12, %s32_s5), 0 }
  0x17   : > { %p996_p5 = por %p955_p2, %p48_p13  ;;  %s36_s9 = ssub.s32 %s884_s16, %s1118_s5 }
  0x18   : > { %p990_p3 = por %p49_p0, %p48_p13  ;;  %p683_p7 = scmp.lt.s32.totalorder %s888_s17, 2 }
  0x19   : > { %p39_p9 = scmp.eq.s32.totalorder %s36_s9, 0  ;;  %s165_s10 = sand.u32 1, %s876_s14  }
  0x1a   : > { %s537_s11 = sshll.u32 %s165_s10, 7  ;;  %s581_s19 = sshll.u32 %s884_s16, 7 }
  0x1b   : > { %s1005_s18 = scalar_select %p39_p9, %s876_s14, %s41_s6  }
  0x1c   : > { %s176_s26 = scalar_lea.hbm %s1099_s0, %s581_s19  ;;  %s169_s28 = scalar_lea.vmem [#allocation2], %s537_s11 }
  0x1d   : > { %s179_s29 = sshll.u32 %s169_s28, 4  ;;  %s177_s21 = sshll.u32 %s176_s26, 4  ;;  %s180_s29 = int_to_ptr.vmem [resolvable:$true] %s179_s29  ;;  %s178_s21 = int_to_ptr.hbm [resolvable:$true] %s177_s21 }
  0x1e   : > { %p675_p2 = pnand %p683_p7, %p990_p3  ;;  %s166_s30 = scalar_lea.sflag [#allocation3], %s165_s10 }
  0x1f   : > { %s893_s4 = smov 128   ;;  %s894_s1 = smov 8  }
  0x20   : > { %677 = dma.hbm_to_vmem [thread:$0]  (!%p675_p2), %s178_s21, 2048, %s180_s29, %s166_s30, %s893_s4, %s893_s4, %s894_s1  }
  0x21   : > { %191 = sbr.rel (%p974_p8) target bundleno = 241 (0xf1), region = 32  ;;  %s1016_s6 = sand.u32 (!%p974_p8), 1, %s872_s13  }
  0x22   : > { %s541_s9 = sshll.u32 (!%p974_p8), %s1016_s6, 7  ;;  %s194_s11 = scalar_lea.sflag (!%p974_p8), [#allocation3], %s1016_s6 }
  0x23   : > { %s1020_s19 = scalar_lea.vmem (!%p974_p8), [#allocation2], %s541_s9 }
  0x26   : > { %855 = dma.done.wait (%p961_p4), %s194_s11, 2048  }
  0x27   : > { %857 = vsyncadd (%p961_p4), %s194_s11, 4294965248 }
  0x28   : > { %859 = dma.done.wait (%p951_p1), [#allocation6], 1024  }
  0x29   : > { %861 = vsyncadd (%p951_p1), [#allocation6], 4294966272  ;;  %v589_v0 = vld [vmem:[#allocation5 + $0x38] sm:$0xff]  ;;  %v588_v1 = vld [vmem:[#allocation5 + $0x30] sm:$0xff]  ;;  %s543_s22 = sshll.u32 %s1016_s6, 6  ;;  %s590_s7 = sshll.u32 %s880_s15, 6 }
  0x2a   : > { %320 = vmatpush.bf16.msra.mxu0 %v589_v0  ;;  %638 = vmatpush.bf16.msra.mxu1 %v589_v0  ;;  %v587_v2 = vld [vmem:[#allocation5 + $0x28] sm:$0xff]  ;;  %v586_v3 = vld [vmem:[#allocation5 + $0x20] sm:$0xff]  ;;  %v585_v4 = vld [vmem:[#allocation5 + $0x18] sm:$0xff]  ;;  %s1050_s27 = scalar_lea.vmem [#allocation7], %s543_s22  ;;  %s431_s25 = scalar_lea.hbm %s1102_s3, %s590_s7 }
  0x2b   : > { %639 = vmatpush.bf16.msra.mxu2 %v589_v0  ;;  %640 = vmatpush.bf16.msra.mxu3 %v589_v0  ;;  %v584_v5 = vld [vmem:[#allocation5 + $0x10] sm:$0xff]  ;;  %v583_v6 = vld [vmem:[#allocation5 + $0x8] sm:$0xff]  ;;  %v582_v7 = vld [vmem:[#allocation5] sm:$0xff]  ;;  %s432_s26 = sshll.u32 %s1050_s27, 4  ;;  %s434_s28 = sshll.u32 %s431_s25, 4  ;;  %s433_s26 = int_to_ptr.vmem [resolvable:$true] %s432_s26  ;;  %s435_s28 = int_to_ptr.hbm [resolvable:$true] %s434_s28 }
  0x2c   : > { %v228_v8 = vld [vmem:[%s1020_s19] sm:$0xff]  ;;  %v229_v9 = vld [vmem:[%s1020_s19 + $0x8] sm:$0xff]  ;;  %v230_v20 = vld [vmem:[%s1020_s19 + $0x10] sm:$0xff]  ;;  %s418_s15 = scalar_lea.sflag [#allocation4], %s1016_s6  ;;  %s816_s29 = sshra.s32 %s435_s28, 4  ;;  %s817_s29 = int_to_ptr.hbm [resolvable:$true] %s816_s29 }
  0x2d   : > { %v232_v10 = vld [vmem:[%s1020_s19 + $0x20] sm:$0xff]  ;;  %v233_v11 = vld [vmem:[%s1020_s19 + $0x28] sm:$0xff]  ;;  %v244_v16 = vpack.c.bf16 %v229_v9, %v228_v8  ;;  %v231_v21 = vld [vmem:[%s1020_s19 + $0x18] sm:$0xff]  ;;  %s818_s21 = scalar_lea.hbm %s817_s29, 64  ;;  %s822_s9 = scalar_lea.hbm %s1102_s3, 128 }
  0x2e   : > { %321 = vmatpush.bf16.msra.mxu0 %v588_v1  ;;  %641 = vmatpush.bf16.msra.mxu1 %v588_v1  ;;  %v236_v12 = vld [vmem:[%s1020_s19 + $0x40] sm:$0xff]  ;;  %v237_v13 = vld [vmem:[%s1020_s19 + $0x48] sm:$0xff]  ;;  %v246_v17 = vpack.c.bf16 %v233_v11, %v232_v10  ;;  %v234_v22 = vld [vmem:[%s1020_s19 + $0x30] sm:$0xff]  ;;  %v245_v28 = vpack.c.bf16 %v231_v21, %v230_v20  ;;  %p819_p1 = scmp.ne.s32.totalorder %s817_s29, %s818_s21  ;;  %p823_p10 = scmp.lt.s32.totalorder %s817_s29, %s1102_s3 }
  0x2f   : > { %642 = vmatpush.bf16.msra.mxu2 %v588_v1  ;;  %643 = vmatpush.bf16.msra.mxu3 %v588_v1  ;;  %v240_v14 = vld [vmem:[%s1020_s19 + $0x60] sm:$0xff]  ;;  %v241_v15 = vld [vmem:[%s1020_s19 + $0x68] sm:$0xff]  ;;  %v248_v18 = vpack.c.bf16 %v237_v13, %v236_v12  ;;  %v235_v23 = vld [vmem:[%s1020_s19 + $0x38] sm:$0xff]  ;;  %p824_p12 = scmp.lt.s32.totalorder %s822_s9, %s818_s21 }
  0x30   : > { %v250_v19 = vpack.c.bf16 %v241_v15, %v240_v14  ;;  %v238_v24 = vld [vmem:[%s1020_s19 + $0x50] sm:$0xff]  ;;  %v239_v25 = vld [vmem:[%s1020_s19 + $0x58] sm:$0xff]  ;;  %v247_v29 = vpack.c.bf16 %v235_v23, %v234_v22  ;;  %v741_v34 = vld [vmem:[%s1101_s2] ss:$0 sm:$0xff]  ;;  %p820_p4 = pnand %p819_p1, %p996_p5 }
  0x31   : > { %v242_v26 = vld [vmem:[%s1020_s19 + $0x70] sm:$0xff]  ;;  %v243_v27 = vld [vmem:[%s1020_s19 + $0x78] sm:$0xff]  ;;  %v249_v30 = vpack.c.bf16 %v239_v25, %v238_v24  ;;  %p825_p13 = por %p824_p12, %p823_p10 }
  0x32   : > { %322 = vmatpush.bf16.msra.mxu0 %v587_v2  ;;  %644 = vmatpush.bf16.msra.mxu1 %v587_v2  ;;  %v251_v31 = vpack.c.bf16 %v243_v27, %v242_v26  ;;  %p821_p8 = pneg %p820_p4 }
  0x33   : > { %645 = vmatpush.bf16.msra.mxu2 %v587_v2  ;;  %646 = vmatpush.bf16.msra.mxu3 %v587_v2 }
  0x34   : > { %p826_p0 = pnand %p825_p13, %p821_p8 }
  0x36   : > { %323 = vmatpush.bf16.msra.mxu0 %v586_v3  ;;  %647 = vmatpush.bf16.msra.mxu1 %v586_v3 }
  0x37   : > { %648 = vmatpush.bf16.msra.mxu2 %v586_v3  ;;  %649 = vmatpush.bf16.msra.mxu3 %v586_v3 }
  0x3a   : > { %324 = vmatpush.bf16.msra.mxu0 %v585_v4  ;;  %650 = vmatpush.bf16.msra.mxu1 %v585_v4 }
  0x3b   : > { %651 = vmatpush.bf16.msra.mxu2 %v585_v4  ;;  %652 = vmatpush.bf16.msra.mxu3 %v585_v4 }
  0x3e   : > { %325 = vmatpush.bf16.msra.mxu0 %v584_v5  ;;  %653 = vmatpush.bf16.msra.mxu1 %v584_v5 }
  0x3f   : > { %654 = vmatpush.bf16.msra.mxu2 %v584_v5  ;;  %655 = vmatpush.bf16.msra.mxu3 %v584_v5 }
  0x42   : > { %326 = vmatpush.bf16.msra.mxu0 %v583_v6  ;;  %656 = vmatpush.bf16.msra.mxu1 %v583_v6 }
  0x43   : > { %657 = vmatpush.bf16.msra.mxu2 %v583_v6  ;;  %658 = vmatpush.bf16.msra.mxu3 %v583_v6 }
  0x46   : > { %327 = vmatpush.bf16.msra.mxu0 %v582_v7  ;;  %659 = vmatpush.bf16.msra.mxu1 %v582_v7 }
  0x47   : > { %660 = vmatpush.bf16.msra.mxu2 %v582_v7  ;;  %661 = vmatpush.bf16.msra.mxu3 %v582_v7 }
  0x49   : > { %328 = vmatmul.bf16.vlgmr.msra.gmra.mxu0 %v244_v16  ;;  %338 = vmatmul.bf16.vlgmr.msra.gmra.mxu1 %v246_v17 }
  0x4a   : > { %348 = vmatmul.bf16.vlgmr.msra.gmra.mxu2 %v248_v18  ;;  %358 = vmatmul.bf16.vlgmr.msra.gmra.mxu3 %v250_v19 }
  0x59   : > { %333 = vmatmul.bf16.gmra.mxu0 %v245_v28  ;;  %343 = vmatmul.bf16.gmra.mxu1 %v247_v29 }
  0x5a   : > { %353 = vmatmul.bf16.gmra.mxu2 %v249_v30  ;;  %363 = vmatmul.bf16.gmra.mxu3 %v251_v31 }
  0xc6   : > { %v329_v32 = vpop.f32.mrf.mxu0  ;;  %v339_v33 = vpop.f32.mrf.mxu1 }
  0xc7   : > { %v330_v35 = vadd.f32 %v741_v34, %v329_v32  ;;  %v340_v36 = vadd.f32 %v741_v34, %v339_v33 }
  0xc9   : > { %v369_v43 = vmax.f32 %v330_v35, 0.0  ;;  %v373_v44 = vmax.f32 %v340_v36, 0.0 }
  0xcd   : > { %v349_v37 = vpop.f32.mrf.mxu2  ;;  %v359_v38 = vpop.f32.mrf.mxu3 }
  0xce   : > { %v331_v39 = vpop.f32.mrf.mxu0  ;;  %v341_v40 = vpop.f32.mrf.mxu1  ;;  %v350_v49 = vadd.f32 %v741_v34, %v349_v37  ;;  %v360_v50 = vadd.f32 %v741_v34, %v359_v38 }
  0xcf   : > { %v332_v41 = vadd.f32 %v741_v34, %v331_v39  ;;  %v342_v42 = vadd.f32 %v741_v34, %v341_v40 }
  0xd0   : > { %v377_v57 = vmax.f32 %v350_v49, 0.0  ;;  %v381_v58 = vmax.f32 %v360_v50, 0.0 }
  0xd1   : > { %v370_v45 = vmax.f32 %v332_v41, 0.0  ;;  %v374_v46 = vmax.f32 %v342_v42, 0.0 }
  0xd3   : > { %v594_v47 = vpack.c.bf16 %v370_v45, %v369_v43  ;;  %v604_v48 = vpack.c.bf16 %v374_v46, %v373_v44 }
  0xd5   : > { %595 = vst [vmem:[%s1050_s27] sm:$0xff] %v594_v47   ;;  %v351_v51 = vpop.f32.mrf.mxu2  ;;  %v361_v52 = vpop.f32.mrf.mxu3 }
  0xd6   : > { %632 = vst [vmem:[%s1050_s27 + $0x10] sm:$0xff] %v604_v48   ;;  %v352_v53 = vadd.f32 %v741_v34, %v351_v51  ;;  %v362_v54 = vadd.f32 %v741_v34, %v361_v52  ;;  %v334_v55 = vpop.f32.mrf.mxu0  ;;  %v344_v56 = vpop.f32.mrf.mxu1 }
  0xd7   : > { %v335_v63 = vadd.f32 %v741_v34, %v334_v55  ;;  %v345_v0 = vadd.f32 %v741_v34, %v344_v56 }
  0xd8   : > { %v378_v59 = vmax.f32 %v352_v53, 0.0  ;;  %v382_v60 = vmax.f32 %v362_v54, 0.0 }
  0xd9   : > { %v371_v7 = vmax.f32 %v335_v63, 0.0  ;;  %v375_v8 = vmax.f32 %v345_v0, 0.0 }
  0xda   : > { %v614_v61 = vpack.c.bf16 %v378_v59, %v377_v57  ;;  %v624_v62 = vpack.c.bf16 %v382_v60, %v381_v58 }
  0xdc   : > { %634 = vst [vmem:[%s1050_s27 + $0x20] sm:$0xff] %v614_v61  }
  0xdd   : > { %636 = vst [vmem:[%s1050_s27 + $0x30] sm:$0xff] %v624_v62   ;;  %v354_v1 = vpop.f32.mrf.mxu2  ;;  %v364_v2 = vpop.f32.mrf.mxu3 }
  0xde   : > { %v336_v3 = vpop.f32.mrf.mxu0  ;;  %v346_v4 = vpop.f32.mrf.mxu1  ;;  %v355_v13 = vadd.f32 %v741_v34, %v354_v1  ;;  %v365_v14 = vadd.f32 %v741_v34, %v364_v2 }
  0xdf   : > { %v337_v5 = vadd.f32 %v741_v34, %v336_v3  ;;  %v347_v6 = vadd.f32 %v741_v34, %v346_v4 }
  0xe0   : > { %v379_v19 = vmax.f32 %v355_v13, 0.0  ;;  %v383_v20 = vmax.f32 %v365_v14, 0.0 }
  0xe1   : > { %v372_v9 = vmax.f32 %v337_v5, 0.0  ;;  %v376_v10 = vmax.f32 %v347_v6, 0.0 }
  0xe3   : > { %v599_v11 = vpack.c.bf16 %v372_v9, %v371_v7  ;;  %v609_v12 = vpack.c.bf16 %v376_v10, %v375_v8 }
  0xe5   : > { %631 = vst [vmem:[%s1050_s27 + $0x8] sm:$0xff] %v599_v11   ;;  %v356_v15 = vpop.f32.mrf.mxu2  ;;  %v366_v16 = vpop.f32.mrf.mxu3 }
  0xe6   : > { %633 = vst [vmem:[%s1050_s27 + $0x18] sm:$0xff] %v609_v12   ;;  %v357_v17 = vadd.f32 %v741_v34, %v356_v15  ;;  %v367_v18 = vadd.f32 %v741_v34, %v366_v16 }
  0xe8   : > { %v380_v21 = vmax.f32 %v357_v17, 0.0  ;;  %v384_v22 = vmax.f32 %v367_v18, 0.0 }
  0xea   : > { %v619_v23 = vpack.c.bf16 %v380_v21, %v379_v19  ;;  %v629_v24 = vpack.c.bf16 %v384_v22, %v383_v20 }
  0xec   : > { %635 = vst [vmem:[%s1050_s27 + $0x28] sm:$0xff] %v619_v23  }
  0xed   : > { %637 = vst [vmem:[%s1050_s27 + $0x38] sm:$0xff] %v629_v24  }
  0xee   : > { %829 = shalt.err (!%p826_p0)
}
  0xef   : > { %s895_s6 = smov 64   ;;  %s896_s1 = smov 4  }
  0xf0   : > { %668 = dma.vmem_to_hbm [thread:$0]  (%p996_p5), %s433_s26, 1024, %s435_s28, %s418_s15, %s895_s6, %s895_s6, %s896_s1  }
  0xf1 PF: > { %s449_s20 = sand.u32 1, %s868_s12   ;;  %p679_p3 = pnand %p536_p11, %p966_p6 }
  0xf2   : > { %s450_s22 = scalar_lea.sflag [#allocation4], %s449_s20 }
  0xf3   : > { %p680_p7 = pneg %p679_p3 }
  0xf5   : > { %863 = dma.done.wait (%p680_p7), %s450_s22, 1024  }
  0xf6   : > { %865 = vsyncadd (%p680_p7), %s450_s22, 4294966272  ;;  %s20_s17 = sadd.s32 1, %s888_s17   ;;  %s1112_s12 = smov %s872_s13 }
  0xf7   : > { %p17_p9 = scmp.ge.s32.totalorder %s20_s17, 4   ;;  %s1113_s13 = smov %s876_s14 }
  0xf8   : > { %s1114_s14 = smov %s1005_s18  ;;  %s1115_s15 = smov %s884_s16 }
  0xf9   : > { %s1116_s16 = smov %s1118_s5  ;;  %19 = sbr.rel (!%p17_p9) target bundleno = 9 (0x9), region = 81 }
  0xfe   :  { %456 = vsyncpa [#allocation3], 1 }
  0xff   :  { %458 = vsyncpa [#allocation3 + $0x1], 1 }
 0x100   :  { %459 = vsyncpa [#allocation6], 1 }
 0x101   :  { %460 = vsyncpa [#allocation4], 1 }
 0x102   :  { %462 = vsyncpa [#allocation4 + $0x1], 1 }

</bundles_post_ra>
